<compile_context>
chip_gen: v5e
topology: v5e:2x2
jax: 0.10.0
libtpu: 0.0.40
codegen_flags: <defaults>
</compile_context>

<pallas_src>
import jax
import jax.numpy as jnp
from jax.experimental import pallas as pl
from jax.experimental.pallas import tpu as pltpu


def _scale_kernel(x_ref, s_ref, o_ref):
    # x_ref: (TR, LANE) block, s_ref: (1, LANE) -> broadcast multiply over rows.
    # Explicit astype keeps the store dtype-correct if x is bf16 and scale f32.
    o_ref[...] = (x_ref[...] * s_ref[...]).astype(o_ref.dtype)


def scale_forward(x: jax.Array, scale: jax.Array) -> jax.Array:
    """Implements Scale.forward: y = x * scale, scale shape (D,), x shape (..., D)."""
    orig_shape = x.shape
    D = orig_shape[-1]
    assert scale.shape == (D,)
    total = x.size
    itemsize = jnp.dtype(x.dtype).itemsize

    # ---- choose a lane-dense 2-D view ------------------------------------
    if D % 128 == 0:
        lane = D
        scale_row = scale.reshape(1, lane)
        x2 = x.reshape(-1, lane)
    elif D < 128 and 128 % D == 0:
        # Fold several channel vectors into one 128-wide lane row; replicate
        # the scale to 128 lanes (O(128) wrapper work, free).
        lane = 128
        scale_row = jnp.tile(scale, lane // D).reshape(1, lane)
        flat = x.reshape(-1)
        pad_elems = (-total) % lane
        if pad_elems:
            flat = jnp.pad(flat, (0, pad_elems))
        x2 = flat.reshape(-1, lane)
    else:
        # TODO(synk): general D that does not fold into 128 lanes keeps partial
        # lane stores; still correct (block last dim equals full array dim).
        lane = D
        scale_row = scale.reshape(1, lane)
        x2 = x.reshape(-1, lane)

    rows = x2.shape[0]

    # ---- row tile: multiple of 8, ~2 MiB per buffer, capped at 1024 rows ---
    budget_rows = max(8, (2 * 1024 * 1024) // (lane * itemsize))
    TR = int(min(1024, budget_rows, max(8, rows)))
    TR = max(8, (TR // 8) * 8)

    padded_rows = ((rows + TR - 1) // TR) * TR
    if padded_rows != rows:
        x2 = jnp.pad(x2, ((0, padded_rows - rows), (0, 0)))

    grid = (padded_rows // TR,)

    out2 = pl.pallas_call(
        _scale_kernel,
        out_shape=jax.ShapeDtypeStruct((padded_rows, lane), x.dtype),
        grid=grid,
        in_specs=[
            pl.BlockSpec((TR, lane), lambda r: (r, 0)),
            pl.BlockSpec((1, lane), lambda r: (0, 0)),  # scale: constant-resident block
        ],
        out_specs=pl.BlockSpec((TR, lane), lambda r: (r, 0)),
        compiler_params=pltpu.CompilerParams(
            dimension_semantics=("parallel",),
        ),
    )(x2, scale_row)

    # ---- undo padding / folding and restore original shape -----------------
    flat_out = out2.reshape(-1)[:total]
    return flat_out.reshape(orig_shape)


if __name__ == "__main__":
    # Deterministic setup: Scale(dim=32, init_value=1.0) -> scale = ones(32),
    # then perturb deterministically so the multiply is non-trivial.
    key = jax.random.PRNGKey(0)
    kx, ks = jax.random.split(key)

    B, S, D = 2, 8, 32
    init_value = 1.0
    scale = init_value * jnp.ones((D,), dtype=jnp.float32)
    scale = scale + 0.1 * jax.random.normal(ks, (D,), dtype=jnp.float32)

    x = jax.random.normal(kx, (B, S, D), dtype=jnp.float32)

    out = scale_forward(x, scale)
    out = jax.block_until_ready(out)

    # correctness check against plain JAX reference (same semantics as PyTorch)
    ref = x * scale
    assert out.shape == x.shape and out.dtype == x.dtype
    assert jnp.allclose(out, ref, atol=1e-6, rtol=1e-6)

    print("KERNEL_OK")
</pallas_src>

<mosaic_0001>
module attributes {stable_mosaic.version = 11 : i64} {
  func.func @_scale_kernel(%arg0: i32, %arg1: memref<8x128xf32, #tpu.memory_space<vmem>>, %arg2: memref<1x128xf32, #tpu.memory_space<vmem>>, %arg3: memref<8x128xf32, #tpu.memory_space<vmem>>) attributes {dimension_semantics = [#tpu.dimension_semantics<parallel>], iteration_bounds = array<i64: 1>, scalar_prefetch = 0 : i64, scratch_operands = 0 : i64, tpu.core_type = #tpu.core_type<tc>, window_params = [{transform_indices = @transform_0, window_bounds = array<i64: 8, 128>}, {pipeline_mode = #tpu.pipeline_mode<synchronous>, transform_indices = @transform_1, window_bounds = array<i64: 1, 128>}, {transform_indices = @transform_2, window_bounds = array<i64: 8, 128>}]} {
    %c0 = arith.constant 0 : index
    %c0_0 = arith.constant 0 : index
    %0 = vector.load %arg1[%c0, %c0_0] : memref<8x128xf32, #tpu.memory_space<vmem>>, vector<8x128xf32>
    %c0_1 = arith.constant 0 : index
    %c0_2 = arith.constant 0 : index
    %1 = vector.load %arg2[%c0_1, %c0_2] : memref<1x128xf32, #tpu.memory_space<vmem>>, vector<1x128xf32>
    %2 = vector.broadcast %1 : vector<1x128xf32> to vector<8x128xf32>
    %3 = arith.mulf %0, %2 : vector<8x128xf32>
    %c0_3 = arith.constant 0 : index
    %c0_4 = arith.constant 0 : index
    %4 = vector.load %arg3[%c0_3, %c0_4] : memref<8x128xf32, #tpu.memory_space<vmem>>, vector<8x128xf32>
    tpu.vector_store %arg3[%c0_3, %c0_4], %3 {strides = array<i32>} : memref<8x128xf32, #tpu.memory_space<vmem>>, vector<8x128xf32>,
    return
  }
  func.func @transform_0(%arg0: i32) -> (i32, i32) {
    %c0_i32 = arith.constant 0 : i32
    %c0_i32_0 = arith.constant 0 : i32
    return %arg0, %c0_i32 : i32, i32
  }
  func.func @transform_1(%arg0: i32) -> (i32, i32) {
    %c0_i32 = arith.constant 0 : i32
    %c0_i32_0 = arith.constant 0 : i32
    %c0_i32_1 = arith.constant 0 : i32
    return %c0_i32, %c0_i32_0 : i32, i32
  }
  func.func @transform_2(%arg0: i32) -> (i32, i32) {
    %c0_i32 = arith.constant 0 : i32
    %c0_i32_0 = arith.constant 0 : i32
    return %arg0, %c0_i32 : i32, i32
  }
}

</mosaic_0001>

<bundles_post_ra>
// kernel: tpu_custom_call.1
= control target key start
LH: loop header
LB: loop body
LE: loop exit
PB: predicated region body
PF: predicated region fallthrough
CT: control target
= control target key end

     0   :  { %7 = vsyncpa [#allocation3], 0  ;;  %s174_s0 = inlined_call_operand.hbm [shape: f32[8,128], index: 0, kind: input, shape index: {}]   ;;  %s175_s1 = inlined_call_operand.hbm [shape: f32[1,128], index: 1, kind: input, shape index: {}]   ;;  %s176_s2 = inlined_call_operand.hbm [shape: f32[8,128], index: 2, kind: output, shape index: {}]  }
   0x1   :  { %8 = vsyncpa [#allocation6], 0 }
   0x2   :  { %9 = vsyncpa [#allocation4], 0  ;;  %s15_s11 = sshll.u32 %s174_s0, 4  ;;  %s147_s12 = smov [#allocation2]   ;;  %s16_s11 = int_to_ptr.hbm [resolvable:$true] %s15_s11 }
   0x3   :  { %s17_s13 = sshll.u32 %s147_s12, 4  ;;  %s26_s16 = sshll.u32 %s175_s1, 4  ;;  %s18_s13 = int_to_ptr.vmem [resolvable:$true] %s17_s13  ;;  %s27_s16 = int_to_ptr.hbm [resolvable:$true] %s26_s16 }
   0x4   :  { %20 = dma.hbm_to_vmem [thread:$0]  %s16_s11, 128, %s18_s13, [#allocation3]  }
   0x5   :  { %s148_s17 = smov [#allocation5]  }
   0x6   :  { %s28_s18 = sshll.u32 %s148_s17, 4  ;;  %s29_s18 = int_to_ptr.vmem [resolvable:$true] %s28_s18 }
   0x7   :  { %31 = dma.hbm_to_vmem [thread:$0]  %s27_s16, 16, %s29_s18, [#allocation6]  }
   0x8   :  { %141 = dma.done.wait [#allocation3], 128  }
   0x9   :  { %142 = vsyncadd [#allocation3], 4294967168 }
   0xa   :  { %143 = dma.done.wait [#allocation6], 16  }
   0xb   :  { %144 = vsyncadd [#allocation6], 4294967280  ;;  %s149_s19 = smov [#allocation7]   ;;  %s54_s22 = sshll.u32 %s176_s2, 4  ;;  %v40_v0 = vld [vmem:[#allocation2] sm:$0xff]  ;;  %s55_s22 = int_to_ptr.hbm [resolvable:$true] %s54_s22 }
   0xc   :  { %s52_s0 = sshll.u32 %s149_s19, 4  ;;  %v68_v1 = vld [vmem:[#allocation5] ss:$0 sm:$0xff]  ;;  %s53_s0 = int_to_ptr.vmem [resolvable:$true] %s52_s0 }
   0xd   :  { %v45_v2 = vmul.f32 %v68_v1, %v40_v0 }
   0xf   :  { %46 = vst [vmem:[#allocation7] sm:$0xff] %v45_v2 }
  0x10   :  { %57 = dma.vmem_to_hbm [thread:$0]  %s53_s0, 128, %s55_s22, [#allocation4]  }
  0x11   :  { %145 = dma.done.wait [#allocation4], 128  }
  0x12   :  { %146 = vsyncadd [#allocation4], 4294967168 }
  0x13   :  { %62 = vsyncpa [#allocation3], 1 }
  0x14   :  { %63 = vsyncpa [#allocation6], 1 }
  0x15   :  { %64 = vsyncpa [#allocation4], 1 }

</bundles_post_ra>
